<compile_context>
chip_gen: v7x
topology: tpu7x:2x2x1
jax: 0.10.0
libtpu: 0.0.40
codegen_flags: <defaults>
</compile_context>

<pallas_src>
import functools

import jax
import jax.numpy as jnp
from jax.experimental import pallas as pl
from jax.experimental.pallas import tpu as pltpu


# ----------------------------- Pallas kernel ------------------------------ #
def _projection_kernel(x_ref, w_ref, b_ref, o_ref):
    # x_ref: [TM, D]   activation row tile
    # w_ref: [D, N]    Linear weight (pre-transposed), VMEM-resident
    # b_ref: [1, N]    Linear bias, VMEM-resident
    # o_ref: [TM, N]
    acc = jnp.dot(x_ref[...], w_ref[...], preferred_element_type=jnp.float32)
    o_ref[...] = (acc + b_ref[...].astype(jnp.float32)).astype(o_ref.dtype)


def _choose_tile_rows(rows: int, dim: int, itemsize: int) -> int:
    """Pick a row-tile size that keeps the double-buffered input under a
    conservative per-buffer VMEM budget (fits v5e/v6e/v7x)."""
    budget_per_buffer = 4 * 1024 * 1024  # 4 MiB/buffer; Pallas double-buffers
    tm = budget_per_buffer // max(1, dim * itemsize)
    tm = min(tm, 2048)  # keep per-step DMA reasonable, amortize ~0.35us/step
    # Keep the second-to-last block dim aligned to the sublane tile.
    sublane = {4: 8, 2: 16, 1: 32}.get(itemsize, 8)
    tm = max(sublane, (tm // sublane) * sublane)
    if tm >= rows:
        return rows  # single full-extent block: no divisibility requirement
    return tm


def _pallas_linear(x2d: jax.Array, w_t: jax.Array, bias: jax.Array) -> jax.Array:
    """y = x2d @ w_t + bias, row-tiled / pipelined Pallas kernel."""
    rows, dim = x2d.shape
    n_bins = w_t.shape[1]
    itemsize = jnp.dtype(x2d.dtype).itemsize

    tm = _choose_tile_rows(rows, dim, itemsize)
    grid = (pl.cdiv(rows, tm),)

    cost = pl.CostEstimate(
        flops=2 * rows * dim * n_bins,
        transcendentals=0,
        bytes_accessed=(
            itemsize * (rows * dim + dim * n_bins + n_bins)
            + itemsize * rows * n_bins
        ),
    )

    return pl.pallas_call(
        _projection_kernel,
        out_shape=jax.ShapeDtypeStruct((rows, n_bins), x2d.dtype),
        grid=grid,
        in_specs=[
            pl.BlockSpec((tm, dim), lambda i: (i, 0)),       # streamed rows
            pl.BlockSpec((dim, n_bins), lambda i: (0, 0)),   # resident weight
            pl.BlockSpec((1, n_bins), lambda i: (0, 0)),     # resident bias
        ],
        out_specs=pl.BlockSpec((tm, n_bins), lambda i: (i, 0)),
        compiler_params=pltpu.CompilerParams(
            dimension_semantics=("parallel",),   # v7x: shard tiles over 2 TCs
            vmem_limit_bytes=32 * 1024 * 1024,   # explicit, safe on all gens
        ),
        cost_estimate=cost,
    )(x2d, w_t, bias)


# --------------------------- functional forward ---------------------------- #
@functools.partial(
    jax.jit, static_argnames=("max_num_objects", "num_action_tokens", "num_action_bins")
)
def token_per_axis_decode(
    transformer_output: jax.Array,
    weight_t: jax.Array,
    bias: jax.Array,
    *,
    max_num_objects: int,
    num_action_tokens: int,
    num_action_bins: int,
) -> jax.Array:
    bsz, seq, dim = transformer_output.shape
    num_tokens_per_timestep = max_num_objects + num_action_tokens
    timesteps = seq // num_tokens_per_timestep

    # Flatten (bsz, seq, dim) -> (bsz*seq, dim): contiguous, no HBM copy.
    rows = bsz * seq
    x2d = transformer_output.reshape(rows, dim)

    # Project *all* tokens (memory-bound => over-compute on non-action tokens
    # is free; we must read every activation byte anyway).
    logits_all = _pallas_linear(x2d, weight_t, bias)

    # Select the action tokens and permute on the tiny [*, n_bins] logits.
    logits_all = logits_all.reshape(
        bsz, timesteps, num_tokens_per_timestep, num_action_bins
    )
    action_logits = logits_all[:, :, max_num_objects - 1 : -1, :]
    # bsz t a bins -> a bsz t bins
    return jnp.transpose(action_logits, (2, 0, 1, 3))


# ------------------------ module-equivalent wrapper ------------------------ #
class TokenPerAxisActionDecoderPallas:
    """JAX/Pallas equivalent of TokenPerAxisActionDecoder."""

    def __init__(
        self,
        *,
        input_dim: int,
        max_num_action_bins: int,
        num_action_tokens_per_timestep: int = 14,
        key: jax.Array,
        param_dtype=jnp.float32,
    ) -> None:
        self._max_num_action_bins = max_num_action_bins
        self._num_action_tokens_per_timestep = num_action_tokens_per_timestep

        # Deterministic parameter init (mimics torch.nn.Linear's uniform init).
        wkey, bkey = jax.random.split(key)
        bound = 1.0 / (input_dim**0.5)
        # torch weight shape: [max_num_action_bins, input_dim]; stored
        # pre-transposed as [input_dim, max_num_action_bins] for the matmul.
        self.weight_t = jax.random.uniform(
            wkey, (input_dim, max_num_action_bins),
            minval=-bound, maxval=bound, dtype=jnp.float32,
        ).astype(param_dtype)
        self.bias = jax.random.uniform(
            bkey, (1, max_num_action_bins),
            minval=-bound, maxval=bound, dtype=jnp.float32,
        ).astype(param_dtype)

    @property
    def num_action_tokens_per_timestep(self) -> int:
        return self._num_action_tokens_per_timestep

    def __call__(self, transformer_output: jax.Array, *, max_num_objects: int) -> jax.Array:
        return token_per_axis_decode(
            transformer_output,
            self.weight_t,
            self.bias,
            max_num_objects=max_num_objects,
            num_action_tokens=self._num_action_tokens_per_timestep,
            num_action_bins=self._max_num_action_bins,
        )


# --------------------------------- demo ----------------------------------- #
if __name__ == "__main__":
    key = jax.random.PRNGKey(0)
    in_key, param_key = jax.random.split(key)

    # Small, shape-consistent example.
    bsz = 2
    timesteps = 3
    max_num_objects = 4
    num_action_tokens_per_timestep = 14
    input_dim = 32
    max_num_action_bins = 16
    seq = timesteps * (max_num_objects + num_action_tokens_per_timestep)  # 54

    transformer_output = jax.random.normal(
        in_key, (bsz, seq, input_dim), dtype=jnp.float32
    )

    decoder = TokenPerAxisActionDecoderPallas(
        input_dim=input_dim,
        max_num_action_bins=max_num_action_bins,
        num_action_tokens_per_timestep=num_action_tokens_per_timestep,
        key=param_key,
    )

    logits = decoder(transformer_output, max_num_objects=max_num_objects)
    logits = jax.block_until_ready(logits)

    # Pure-JAX reference of the same forward pass.
    per_t = transformer_output.reshape(
        bsz, timesteps, max_num_objects + num_action_tokens_per_timestep, input_dim
    )
    act = per_t[:, :, max_num_objects - 1 : -1, :]
    ref = jnp.einsum("btad,dn->btan", act, decoder.weight_t) + decoder.bias[0]
    ref = jnp.transpose(ref, (2, 0, 1, 3))

    assert logits.shape == (
        num_action_tokens_per_timestep, bsz, timesteps, max_num_action_bins
    ), logits.shape
    assert jnp.allclose(logits, ref, atol=1e-5, rtol=1e-5)

    print("KERNEL_OK")
</pallas_src>

<mosaic_0001>
module attributes {stable_mosaic.version = 11 : i64} {
  func.func @_projection_kernel(%arg0: i32, %arg1: memref<108x32xf32, #tpu.memory_space<vmem>>, %arg2: memref<32x16xf32, #tpu.memory_space<vmem>>, %arg3: memref<1x16xf32, #tpu.memory_space<vmem>>, %arg4: memref<108x16xf32, #tpu.memory_space<vmem>>) attributes {dimension_semantics = [#tpu.dimension_semantics<parallel>], iteration_bounds = array<i64: 1>, scalar_prefetch = 0 : i64, scratch_operands = 0 : i64, tpu.core_type = #tpu.core_type<tc>, window_params = [{transform_indices = @transform_0, window_bounds = array<i64: 108, 32>}, {pipeline_mode = #tpu.pipeline_mode<synchronous>, transform_indices = @transform_1, window_bounds = array<i64: 32, 16>}, {pipeline_mode = #tpu.pipeline_mode<synchronous>, transform_indices = @transform_2, window_bounds = array<i64: 1, 16>}, {transform_indices = @transform_3, window_bounds = array<i64: 108, 16>}]} {
    %c0 = arith.constant 0 : index
    %c0_0 = arith.constant 0 : index
    %0 = vector.load %arg1[%c0, %c0_0] : memref<108x32xf32, #tpu.memory_space<vmem>>, vector<108x32xf32>
    %c0_1 = arith.constant 0 : index
    %c0_2 = arith.constant 0 : index
    %1 = vector.load %arg2[%c0_1, %c0_2] : memref<32x16xf32, #tpu.memory_space<vmem>>, vector<32x16xf32>
    %cst = arith.constant dense<0.000000e+00> : vector<108x16xf32>
    %2 = tpu.matmul %0, %1, %cst {dimension_numbers = #tpu.dot_dimension_numbers<[1], [0], [0], [1], [0, 0, 1, 1], [], []>} : vector<108x32xf32>, vector<32x16xf32>, vector<108x16xf32> -> vector<108x16xf32>
    %c0_3 = arith.constant 0 : index
    %c0_4 = arith.constant 0 : index
    %3 = vector.load %arg3[%c0_3, %c0_4] : memref<1x16xf32, #tpu.memory_space<vmem>>, vector<1x16xf32>
    %4 = vector.broadcast %3 : vector<1x16xf32> to vector<108x16xf32>
    %5 = arith.addf %2, %4 : vector<108x16xf32>
    %c0_5 = arith.constant 0 : index
    %c0_6 = arith.constant 0 : index
    %6 = vector.load %arg4[%c0_5, %c0_6] : memref<108x16xf32, #tpu.memory_space<vmem>>, vector<108x16xf32>
    tpu.vector_store %arg4[%c0_5, %c0_6], %5 {strides = array<i32>} : memref<108x16xf32, #tpu.memory_space<vmem>>, vector<108x16xf32>,
    return
  }
  func.func @transform_0(%arg0: i32) -> (i32, i32) {
    %c0_i32 = arith.constant 0 : i32
    %c0_i32_0 = arith.constant 0 : i32
    return %arg0, %c0_i32 : i32, i32
  }
  func.func @transform_1(%arg0: i32) -> (i32, i32) {
    %c0_i32 = arith.constant 0 : i32
    %c0_i32_0 = arith.constant 0 : i32
    %c0_i32_1 = arith.constant 0 : i32
    return %c0_i32, %c0_i32_0 : i32, i32
  }
  func.func @transform_2(%arg0: i32) -> (i32, i32) {
    %c0_i32 = arith.constant 0 : i32
    %c0_i32_0 = arith.constant 0 : i32
    %c0_i32_1 = arith.constant 0 : i32
    return %c0_i32, %c0_i32_0 : i32, i32
  }
  func.func @transform_3(%arg0: i32) -> (i32, i32) {
    %c0_i32 = arith.constant 0 : i32
    %c0_i32_0 = arith.constant 0 : i32
    return %arg0, %c0_i32 : i32, i32
  }
}

</mosaic_0001>

<bundles_post_ra>
// kernel: token_per_axis_decode.1
= control target key start
LH: loop header
LB: loop body
LE: loop exit
PB: predicated region body
PF: predicated region fallthrough
CT: control target
= control target key end

     0   :  { %vm39_vm0 = vcmask 261120   ;;  %vm217_vm1 = vcmask 130048   ;;  %vm231_vm2 = vcmask 125952   ;;  %s457_s1 = inlined_call_operand.vmem [shape: f32[32,16], index: 1, kind: input, shape index: {}]   ;;  %s458_s0 = inlined_call_operand.vmem [shape: f32[108,32], index: 0, kind: input, shape index: {}]   ;;  %s459_s2 = inlined_call_operand.vmem [shape: f32[1,16], index: 2, kind: input, shape index: {}]   ;;  %s460_s3 = inlined_call_operand.vmem [shape: f32[108,16], index: 3, kind: output, shape index: {}]  }
   0x1   :  { %v28_v0 = vld [vmem:[%s457_s1] sm:$0xff]  ;;  %v29_v1 = vld [vmem:[%s457_s1 + $0x8] sm:$0xff]  ;;  %v30_v2 = vld [vmem:[%s457_s1 + $0x10] sm:$0xff] }
   0x2   :  { %v299_v3 = vpack.c.bf16 %v29_v1, %v28_v0  ;;  %v31_v4 = vld [vmem:[%s457_s1 + $0x18] sm:$0xff]  ;;  %v14_v5 = vld [vmem:[%s458_s0] sm:$0xff]  ;;  %v15_v8 = vld [vmem:[%s458_s0 + $0x8] sm:$0xff] }
   0x3   :  { %v303_v6 = vpack.c.bf16 %v31_v4, %v30_v2  ;;  %278 = vmatprep.mubr.msk.f32.mxu0 %vm39_vm0, %v14_v5  ;;  %v22_v7 = vld [vmem:[%s458_s0 + $0x40] sm:$0xff]  ;;  %v23_v9 = vld [vmem:[%s458_s0 + $0x48] sm:$0xff]  ;;  %v16_v10 = vld [vmem:[%s458_s0 + $0x10] sm:$0xff] }
   0x4   :  { %300 = vmatprep.subr.bf16.mxu0 %v299_v3  ;;  %307 = vmatprep.subr.bf16.mxu1 %v299_v3  ;;  %v24_v11 = vld [vmem:[%s458_s0 + $0x50] sm:$0xff]  ;;  %v17_v12 = vld [vmem:[%s458_s0 + $0x18] sm:$0xff]  ;;  %v18_v14 = vld [vmem:[%s458_s0 + $0x20] sm:$0xff] }
   0x5   :  { %302 = vmatpush3.bf16.msra.mxu0 %v299_v3  ;;  %309 = vmatpush3.bf16.msra.mxu1 %v299_v3  ;;  %v25_v13 = vld [vmem:[%s458_s0 + $0x58] sm:$0xff]  ;;  %v26_v15 = vld [vmem:[%s458_s0 + $0x60] sm:$0xff]  ;;  %v19_v16 = vld [vmem:[%s458_s0 + $0x28] sm:$0xff] }
   0x6   :  { %304 = vmatprep.subr.bf16.mxu0 %v303_v6  ;;  %308 = vmatprep.subr.bf16.mxu1 %v303_v6  ;;  %v27_v17 = vld [vmem:[%s458_s0 + $0x68] sm:$0xf]  ;;  %v20_v18 = vld [vmem:[%s458_s0 + $0x30] sm:$0xff]  ;;  %v21_v19 = vld [vmem:[%s458_s0 + $0x38] sm:$0xff] }
   0x7   :  { %290 = vmatprep.mubr.msk.f32.mxu1 %vm39_vm0, %v22_v7  ;;  %v237_v20 = vld [vmem:[%s459_s2] ss:$0 sm:$0xff] }
   0x9   :  { %306 = vmatpush3.bf16.msra.mxu0 %v303_v6  ;;  %310 = vmatpush3.bf16.msra.mxu1 %v303_v6 }
   0xc   :  { %279 = vmatmul.mubr.msk.f32.vlgmr.msra.gmra.mrb[0].mxu0 %vm39_vm0, %v15_v8  ;;  %291 = vmatmul.mubr.msk.f32.vlgmr.msra.gmra.mrb[0].mxu1 %vm39_vm0, %v23_v9 }
   0xd   :  { %281 = vmatprep.mubr.msk.f32.mxu0 %vm39_vm0, %v16_v10  ;;  %293 = vmatprep.mubr.msk.f32.mxu1 %vm39_vm0, %v24_v11 }
  0x10   :  { %282 = vmatmul.mubr.msk.f32.gmra.mrb[2].mxu0 %vm39_vm0, %v17_v12  ;;  %294 = vmatmul.mubr.msk.f32.gmra.mrb[2].mxu1 %vm39_vm0, %v25_v13 }
  0x11   :  { %284 = vmatprep.mubr.msk.f32.mxu0 %vm39_vm0, %v18_v14  ;;  %296 = vmatprep.mubr.msk.f32.mxu1 %vm39_vm0, %v26_v15 }
  0x14   :  { %285 = vmatmul.mubr.msk.f32.gmra.mrb[4].mxu0 %vm39_vm0, %v19_v16  ;;  %297 = vmatmul.mubr.msk.f32.gmra.mrb[4].mxu1 %vm39_vm0, %v27_v17 }
  0x15   :  { %287 = vmatprep.mubr.msk.f32.mxu0 %vm39_vm0, %v20_v18 }
  0x18   :  { %288 = vmatmul.mubr.msk.f32.gmra.mrb[6].mxu0 %vm39_vm0, %v21_v19 }
  0xdf   :  { %v280_v21 = vpop.f32.mrb[0].mxu0  ;;  %v292_v22 = vpop.f32.mrb[0].mxu1 }
  0xe0   :  { %v154_v23 = vadd.f32 %v280_v21, %v237_v20  ;;  %v148_v24 = vpop.f32.mrb[1].mxu0  ;;  %v194_v25 = vadd.f32 %v292_v22, %v237_v20  ;;  %v188_v26 = vpop.f32.mrb[1].mxu1 }
  0xe1   :  { %v149_v27 = vadd.f32 %v237_v20, %v148_v24  ;;  %v189_v28 = vadd.f32 %v237_v20, %v188_v26 }
  0xe2   :  { %219 = vst.msk [vmem:[%s460_s3 + $0x8] sm:$0xff] %vm217_vm1, %v154_v23  ;;  %227 = vst.msk [vmem:[%s460_s3 + $0x48] sm:$0xff] %vm217_vm1, %v194_v25 }
  0xe3   :  { %218 = vst.msk [vmem:[%s460_s3] sm:$0xff] %vm217_vm1, %v149_v27  ;;  %v283_v29 = vpop.f32.mrb[2].mxu0  ;;  %226 = vst.msk [vmem:[%s460_s3 + $0x40] sm:$0xff] %vm217_vm1, %v189_v28  ;;  %v295_v30 = vpop.f32.mrb[2].mxu1 }
  0xe4   :  { %v164_v31 = vadd.f32 %v283_v29, %v237_v20  ;;  %v158_v32 = vpop.f32.mrb[3].mxu0  ;;  %v204_v33 = vadd.f32 %v295_v30, %v237_v20  ;;  %v198_v34 = vpop.f32.mrb[3].mxu1 }
  0xe5   :  { %v159_v35 = vadd.f32 %v237_v20, %v158_v32  ;;  %v199_v36 = vadd.f32 %v237_v20, %v198_v34 }
  0xe6   :  { %221 = vst.msk [vmem:[%s460_s3 + $0x18] sm:$0xff] %vm217_vm1, %v164_v31  ;;  %229 = vst.msk [vmem:[%s460_s3 + $0x58] sm:$0xff] %vm217_vm1, %v204_v33 }
  0xe7   :  { %220 = vst.msk [vmem:[%s460_s3 + $0x10] sm:$0xff] %vm217_vm1, %v159_v35  ;;  %v286_v37 = vpop.f32.mrb[4].mxu0  ;;  %228 = vst.msk [vmem:[%s460_s3 + $0x50] sm:$0xff] %vm217_vm1, %v199_v36  ;;  %v298_v38 = vpop.f32.mrb[4].mxu1 }
  0xe8   :  { %v174_v39 = vadd.f32 %v286_v37, %v237_v20  ;;  %v168_v40 = vpop.f32.mrb[5].mxu0  ;;  %v214_v41 = vadd.f32 %v298_v38, %v237_v20  ;;  %v208_v42 = vpop.f32.mrb[5].mxu1 }
  0xe9   :  { %v169_v43 = vadd.f32 %v237_v20, %v168_v40  ;;  %v209_v44 = vadd.f32 %v237_v20, %v208_v42 }
  0xea   :  { %223 = vst.msk [vmem:[%s460_s3 + $0x28] sm:$0xff] %vm217_vm1, %v174_v39 }
  0xeb   :  { %232 = vst.msk [vmem:[%s460_s3 + $0x68] sm:$0xf] %vm231_vm2, %v214_v41  ;;  %v289_v45 = vpop.f32.mrb[6].mxu0 }
  0xec   :  { %222 = vst.msk [vmem:[%s460_s3 + $0x20] sm:$0xff] %vm217_vm1, %v169_v43  ;;  %230 = vst.msk [vmem:[%s460_s3 + $0x60] sm:$0xff] %vm217_vm1, %v209_v44  ;;  %v184_v46 = vadd.f32 %v289_v45, %v237_v20  ;;  %v178_v47 = vpop.f32.mrb[7].mxu0 }
  0xed   :  { %v179_v48 = vadd.f32 %v237_v20, %v178_v47 }
  0xee   :  { %225 = vst.msk [vmem:[%s460_s3 + $0x38] sm:$0xff] %vm217_vm1, %v184_v46 }
  0xef   :  { %224 = vst.msk [vmem:[%s460_s3 + $0x30] sm:$0xff] %vm217_vm1, %v179_v48 }

</bundles_post_ra>
